<compile_context>
chip_gen: v5e
topology: v5e:2x2
jax: 0.10.0
libtpu: 0.0.40
codegen_flags: <defaults>
</compile_context>

<pallas_src>
import numpy as np
import jax
import jax.numpy as jnp
from jax import lax
from jax.experimental import pallas as pl
from jax.experimental.pallas import tpu as pltpu

# Small, module-consistent config (stand-ins for vocab=50257, d_model=768,
# max_len=128).
VOCAB = 256
D_MODEL = 128
MAX_LEN = 32
SEQ = 16
BATCH = 2
TOKEN_TILE = 16          # tokens per grid step (multiple of 8, divides B*S)


def embedding_kernel(ids_ref, table_ref, pe_ref, out_ref):
    """One token tile per grid step.

    ids_ref:   VMEM [T, 1] int32   token ids for this tile (clamped to [0,V))
    table_ref: VMEM [V, D]         token embedding table (VMEM-resident)
    pe_ref:    VMEM [T, D]         positional embeddings, pre-tiled to [N, D]
    out_ref:   VMEM [T, D]         output tile (lane-dense, D = 128)
    """
    t = out_ref.shape[0]                 # T (static)
    v = table_ref.shape[0]               # V (static)

    # One-hot gather on the MXU: onehot[T, V] @ table[V, D] -> [T, D].
    ids_col = ids_ref[...]                                        # [T, 1] i32
    iota = lax.broadcasted_iota(jnp.int32, (t, v), 1)             # [T, V]
    onehot = (ids_col == iota).astype(table_ref.dtype)            # [T, V]
    gathered = jnp.dot(onehot, table_ref[...],
                       preferred_element_type=jnp.float32)        # [T, D] f32

    # Single full-vreg positional add, then one unmasked store.
    out_ref[...] = (gathered + pe_ref[...].astype(jnp.float32)).astype(
        out_ref.dtype)


def embedding_forward(token_ids, table, pe, *, token_tile=TOKEN_TILE):
    """token_ids: [B, S] int32; table: [V, D]; pe: [MAX_LEN, D] -> [B, S, D]."""
    B, S = token_ids.shape
    V, D = table.shape
    N = B * S
    assert N % token_tile == 0 and token_tile % 8 == 0
    n_tiles = N // token_tile

    # Clamp ids on the XLA side: out-of-range ids would otherwise select no
    # one-hot row (silently zero) or, in a dynamic-slice design, read OOB VMEM.
    ids_flat = jnp.clip(token_ids.reshape(N).astype(jnp.int32), 0, V - 1)
    ids_col = ids_flat.reshape(N, 1)                  # [N, 1] for VMEM layout

    # pe[:X.shape[1]] broadcast over batch, pre-tiled to [N, D] (row-major
    # flattening of [B, S, D]) so the kernel add is one full-block VPU op.
    pe_full = jnp.tile(pe[:S], (B, 1))                # [N, D]

    bytes_accessed = (ids_col.size * 4 + table.size * 4
                      + pe_full.size * 4 + N * D * 4)

    out_flat = pl.pallas_call(
        embedding_kernel,
        out_shape=jax.ShapeDtypeStruct((N, D), table.dtype),
        grid_spec=pltpu.PrefetchScalarGridSpec(
            num_scalar_prefetch=0,
            grid=(n_tiles,),
            in_specs=[
                # per-tile token ids
                pl.BlockSpec((token_tile, 1), lambda i: (i, 0)),
                # full table, same block every step (stays VMEM-resident)
                pl.BlockSpec((V, D), lambda i: (0, 0)),
                # per-tile positional rows
                pl.BlockSpec((token_tile, D), lambda i: (i, 0)),
            ],
            out_specs=pl.BlockSpec((token_tile, D), lambda i: (i, 0)),
        ),
        compiler_params=pltpu.CompilerParams(
            dimension_semantics=("parallel",)),
        cost_estimate=pl.CostEstimate(
            flops=2 * N * V * D,          # one-hot matmul
            transcendentals=0,
            bytes_accessed=bytes_accessed),
    )(ids_col, table, pe_full)

    return out_flat.reshape(B, S, D)


def embedding_reference(token_ids, table, pe):
    """Pure-JAX reference matching the PyTorch module's forward semantics."""
    S = token_ids.shape[1]
    return jnp.take(table, token_ids, axis=0) + pe[:S][None, :, :]


if __name__ == "__main__":
    root = jax.random.PRNGKey(0)
    k_ids, k_tab, k_pe = jax.random.split(root, 3)

    table = jax.random.normal(k_tab, (VOCAB, D_MODEL), jnp.float32) * 0.02
    pe = jax.random.normal(k_pe, (MAX_LEN, D_MODEL), jnp.float32) * 0.02
    token_ids = jax.random.randint(k_ids, (BATCH, SEQ), 0, VOCAB,
                                   dtype=jnp.int32)

    out = embedding_forward(token_ids, table, pe)
    out = jax.block_until_ready(out)

    ref = embedding_reference(token_ids, table, pe)
    np.testing.assert_allclose(np.asarray(out), np.asarray(ref),
                               rtol=1e-5, atol=1e-5)

    print("KERNEL_OK")
</pallas_src>

<mosaic_0001>
module attributes {stable_mosaic.version = 11 : i64} {
  func.func @embedding_kernel(%arg0: i32, %arg1: memref<16x1xi32, #tpu.memory_space<vmem>>, %arg2: memref<256x128xf32, #tpu.memory_space<vmem>>, %arg3: memref<16x128xf32, #tpu.memory_space<vmem>>, %arg4: memref<16x128xf32, #tpu.memory_space<vmem>>) attributes {dimension_semantics = [#tpu.dimension_semantics<parallel>], iteration_bounds = array<i64: 2>, scalar_prefetch = 0 : i64, scratch_operands = 0 : i64, tpu.core_type = #tpu.core_type<tc>, window_params = [{transform_indices = @transform_0, window_bounds = array<i64: 16, 1>}, {pipeline_mode = #tpu.pipeline_mode<synchronous>, transform_indices = @transform_1, window_bounds = array<i64: 256, 128>}, {transform_indices = @transform_2, window_bounds = array<i64: 16, 128>}, {transform_indices = @transform_3, window_bounds = array<i64: 16, 128>}]} {
    %c0 = arith.constant 0 : index
    %c0_0 = arith.constant 0 : index
    %0 = vector.load %arg1[%c0, %c0_0] : memref<16x1xi32, #tpu.memory_space<vmem>>, vector<16x1xi32>
    %1 = tpu.iota {dimensions = array<i32: 1>} : vector<16x256xi32>
    %2 = vector.broadcast %0 : vector<16x1xi32> to vector<16x256xi32>
    %3 = arith.cmpi eq, %2, %1 : vector<16x256xi32>
    %4 = arith.extui %3 : vector<16x256xi1> to vector<16x256xi32>
    %5 = arith.sitofp %4 : vector<16x256xi32> to vector<16x256xf32>
    %c0_1 = arith.constant 0 : index
    %c0_2 = arith.constant 0 : index
    %6 = vector.load %arg2[%c0_1, %c0_2] : memref<256x128xf32, #tpu.memory_space<vmem>>, vector<256x128xf32>
    %cst = arith.constant dense<0.000000e+00> : vector<16x128xf32>
    %7 = tpu.matmul %5, %6, %cst {dimension_numbers = #tpu.dot_dimension_numbers<[1], [0], [0], [1], [0, 0, 1, 1], [], []>} : vector<16x256xf32>, vector<256x128xf32>, vector<16x128xf32> -> vector<16x128xf32>
    %c0_3 = arith.constant 0 : index
    %c0_4 = arith.constant 0 : index
    %8 = vector.load %arg3[%c0_3, %c0_4] : memref<16x128xf32, #tpu.memory_space<vmem>>, vector<16x128xf32>
    %9 = arith.addf %7, %8 : vector<16x128xf32>
    %c0_5 = arith.constant 0 : index
    %c0_6 = arith.constant 0 : index
    %10 = vector.load %arg4[%c0_5, %c0_6] : memref<16x128xf32, #tpu.memory_space<vmem>>, vector<16x128xf32>
    tpu.vector_store %arg4[%c0_5, %c0_6], %9 {strides = array<i32>} : memref<16x128xf32, #tpu.memory_space<vmem>>, vector<16x128xf32>,
    return
  }
  func.func @transform_0(%arg0: i32) -> (i32, i32) {
    %c0_i32 = arith.constant 0 : i32
    %c0_i32_0 = arith.constant 0 : i32
    return %arg0, %c0_i32 : i32, i32
  }
  func.func @transform_1(%arg0: i32) -> (i32, i32) {
    %c0_i32 = arith.constant 0 : i32
    %c0_i32_0 = arith.constant 0 : i32
    %c0_i32_1 = arith.constant 0 : i32
    return %c0_i32, %c0_i32_0 : i32, i32
  }
  func.func @transform_2(%arg0: i32) -> (i32, i32) {
    %c0_i32 = arith.constant 0 : i32
    %c0_i32_0 = arith.constant 0 : i32
    return %arg0, %c0_i32 : i32, i32
  }
  func.func @transform_3(%arg0: i32) -> (i32, i32) {
    %c0_i32 = arith.constant 0 : i32
    %c0_i32_0 = arith.constant 0 : i32
    return %arg0, %c0_i32 : i32, i32
  }
}

</mosaic_0001>

<bundles_post_ra>
// kernel: tpu_custom_call.1
= control target key start
LH: loop header
LB: loop body
LE: loop exit
PB: predicated region body
PF: predicated region fallthrough
CT: control target
= control target key end

     0   :  { %8 = vsyncpa [#allocation3], 0  ;;  %s761_s0 = inlined_call_operand.vmem [shape: s32[32,1], index: 0, kind: input, shape index: {}]   ;;  %s762_s1 = inlined_call_operand.hbm [shape: f32[256,128], index: 1, kind: input, shape index: {}]   ;;  %s763_s2 = inlined_call_operand.vmem [shape: f32[32,128], index: 2, kind: input, shape index: {}]   ;;  %s764_s3 = inlined_call_operand.hbm [shape: f32[32,128], index: 3, kind: output, shape index: {}]  }
   0x1   :  { %9 = vsyncpa [#allocation4], 0 }
   0x2   :  { %11 = vsyncpa [#allocation4 + $0x1], 0  ;;  %s657_s12 = smov 0   ;;  %s659_s13 = smov 0  }
   0x3   :  { %s661_s14 = smov 0   ;;  %s663_s15 = smov 0  }
   0x4 LB: > { %s678_s16 = sadd.s32 4294967295, %s628_s15   ;;  %s418_s17 = sadd.s32 4294967294, %s628_s15   ;;  %s628_s15 = sphi %s663_s15, %s770_s15   ;;  %s624_s14 = sphi %s661_s14, %s769_s14   ;;  %s620_s13 = sphi %s659_s13, %s768_s13   ;;  %s616_s12 = sphi %s657_s12, %s767_s12  }
   0x5   : > { %s682_s18 = sadd.s32 1, %s628_s15   ;;  %s97_s19 = sadd.s32 1, %s624_s14 }
   0x6   : > { %s94_s20 = ssub.s32 %s628_s15, %s682_s18  ;;  %p107_p0 = scmp.ne.s32.totalorder %s624_s14, %s620_s13 }
   0x7   : > { %p95_p1 = scmp.eq.s32.totalorder %s94_s20, 0  ;;  %p108_p2 = scmp.eq.s32.totalorder %s678_s16, 1 }
   0x8   : > { %p113_p3 = scmp.ne.s32.totalorder %s620_s13, %s616_s12  ;;  %p114_p4 = scmp.eq.s32.totalorder %s418_s17, 1 }
   0x9   : > { %s693_s21 = scalar_select %p95_p1, %s624_s14, %s97_s19  }
   0xa   : > { %p695_p5 = por %p108_p2, %p107_p0  ;;  %p699_p6 = por %p114_p4, %p113_p3 }
   0xb   : > { %p419_p7 = scmp.ge.s32.totalorder %s628_s15, 1  ;;  %p121_p8 = scmp.lt.s32.totalorder %s628_s15, 3 }
   0xc   : > { %p489_p9 = scmp.eq.s32.totalorder %s678_s16, 0  ;;  %s132_s26 = sshll.u32 %s762_s1, 4  ;;  %s133_s26 = int_to_ptr.hbm [resolvable:$true] %s132_s26 }
   0xd   : > { %p122_p10 = pnand %p419_p7, %p121_p8  ;;  %s630_s27 = smov [#allocation2]  }
   0xe   : > { %s134_s28 = sshll.u32 %s630_s27, 4  ;;  %s631_s29 = smov 128   ;;  %s135_s28 = int_to_ptr.vmem [resolvable:$true] %s134_s28 }
   0xf   : > { %p481_p11 = pneg %p122_p10  ;;  %s632_s30 = smov 8  }
  0x10   : > { %168 = sbr.rel (%p122_p10) target bundleno = 287 (0x11f), region = 32 }
  0x11   : > { %p482_p12 = pnand %p489_p9, %p481_p11 }
  0x13   : > { %484 = dma.hbm_to_vmem [thread:$0]  (!%p482_p12), %s133_s26, 4096, %s135_s28, [#allocation3], %s631_s29, %s631_s29, %s632_s30  }
  0x15   : > { %607 = dma.done.wait (%p489_p9), [#allocation3], 4096  }
  0x16   : > { %609 = vsyncadd (%p489_p9), [#allocation3], 4294963200  ;;  %s425_s4 = sshll.u32 %s678_s16, 1  ;;  %v633_v0 = vmov 0   ;;  %v249_v2 = vld [vmem:[#allocation2 + $0x78] sm:$0xff]  ;;  %v248_v4 = vld [vmem:[#allocation2 + $0x70] sm:$0xff]  ;;  %v213_v35 = vlaneseq }
  0x17   : > { %531 = vset.pattern.permute.xlu0 %v633_v0  ;;  %p199_p13 = scmp.lt.s32.totalorder %s425_s4, 3  ;;  %443 = vmatpush.msra.mxu2 %v249_v2  ;;  %v265_v3 = vld [vmem:[#allocation2 + $0xf8] sm:$0xff]  ;;  %v264_v5 = vld [vmem:[#allocation2 + $0xf0] sm:$0xff]  ;;  %v247_v6 = vld [vmem:[#allocation2 + $0x68] sm:$0xff]  ;;  %v634_v39 = vmov 1.0   ;;  %s195_s9 = sand.u32 1, %s620_s13  }
  0x18   : > { %459 = vmatpush.msra.mxu3 %v265_v3  ;;  %268 = vmatpush.msra.mxu0 %v249_v2  ;;  %v263_v7 = vld [vmem:[#allocation2 + $0xe8] sm:$0xff]  ;;  %v246_v8 = vld [vmem:[#allocation2 + $0x60] sm:$0xff]  ;;  %v245_v11 = vld [vmem:[#allocation2 + $0x58] sm:$0xff]  ;;  %v214_v36 = vand.u32 127, %v213_v35  ;;  %s424_s19 = sshll.u32 %s195_s9, 4  ;;  %s442_s20 = sshll.u32 %s678_s16, 4 }
  0x19   : > { %s772_s4 = smov (!%p199_p13, %s425_s4), 3  ;;  %444 = vmatpush.msra.mxu2 %v248_v4  ;;  %291 = vmatpush.msra.mxu1 %v265_v3  ;;  %v262_v9 = vld [vmem:[#allocation2 + $0xe0] sm:$0xff]  ;;  %v261_v12 = vld [vmem:[#allocation2 + $0xd8] sm:$0xff]  ;;  %v244_v13 = vld [vmem:[#allocation2 + $0x50] sm:$0xff]  ;;  %s328_s26 = scalar_lea.hbm %s764_s3, %s442_s20 }
  0x1a   : > { %s426_s5 = sshll.u32 %s772_s4, 3  ;;  %460 = vmatpush.msra.mxu3 %v264_v5  ;;  %269 = vmatpush.msra.mxu0 %v248_v4  ;;  %v260_v14 = vld [vmem:[#allocation2 + $0xd0] sm:$0xff]  ;;  %v243_v15 = vld [vmem:[#allocation2 + $0x48] sm:$0xff]  ;;  %v242_v17 = vld [vmem:[#allocation2 + $0x40] sm:$0xff]  ;;  %v215_v37 = vadd.s32 128, %v214_v36  ;;  %s197_s27 = scalar_lea.vmem [#allocation5], %s424_s19 }
  0x1b   : > { %s202_s8 = scalar_lea.vmem %s761_s0, %s426_s5  ;;  %445 = vmatpush.msra.mxu2 %v247_v6  ;;  %292 = vmatpush.msra.mxu1 %v264_v5  ;;  %v259_v16 = vld [vmem:[#allocation2 + $0xc8] sm:$0xff]  ;;  %v258_v18 = vld [vmem:[#allocation2 + $0xc0] sm:$0xff]  ;;  %v241_v19 = vld [vmem:[#allocation2 + $0x38] sm:$0xff]  ;;  %s208_s17 = scalar_lea.vmem %s763_s2, %s426_s5 }
  0x1c   : > { %v212_v1 = vld [vmem:[%s202_s8 + $0x8] sm:$0xff]  ;;  %v211_v10 = vld [vmem:[%s202_s8] sm:$0xff]  ;;  %461 = vmatpush.msra.mxu3 %v263_v7  ;;  %270 = vmatpush.msra.mxu0 %v247_v6  ;;  %v257_v20 = vld [vmem:[#allocation2 + $0xb8] sm:$0xff]  ;;  %s329_s28 = sshll.u32 %s197_s27, 4  ;;  %s331_s29 = sshll.u32 %s328_s26, 4  ;;  %s330_s28 = int_to_ptr.vmem [resolvable:$true] %s329_s28  ;;  %s332_s29 = int_to_ptr.hbm [resolvable:$true] %s331_s29 }
  0x1d   : > { %220 = vperm.xlu0 %531, %v212_v1   ;;  %446 = vmatpush.msra.mxu2 %v246_v8  ;;  %v240_v21 = vld [vmem:[#allocation2 + $0x30] sm:$0xff]  ;;  %v239_v23 = vld [vmem:[#allocation2 + $0x28] sm:$0xff]  ;;  %v238_v25 = vld [vmem:[#allocation2 + $0x20] sm:$0xff]  ;;  %s317_s16 = scalar_lea.sflag [#allocation4], %s195_s9  ;;  %s576_s30 = sshra.s32 %s332_s29, 4  ;;  %s577_s30 = int_to_ptr.hbm [resolvable:$true] %s576_s30 }
  0x1e   : > { %293 = vmatpush.msra.mxu1 %v263_v7  ;;  %462 = vmatpush.msra.mxu3 %v262_v9  ;;  %v256_v22 = vld [vmem:[#allocation2 + $0xb0] sm:$0xff]  ;;  %v255_v24 = vld [vmem:[#allocation2 + $0xa8] sm:$0xff]  ;;  %v254_v26 = vld [vmem:[#allocation2 + $0xa0] sm:$0xff]  ;;  %s578_s4 = scalar_lea.hbm %s577_s30, 16  ;;  %s582_s7 = scalar_lea.hbm %s764_s3, 32 }
  0x1f   : > { %271 = vmatpush.msra.mxu0 %v246_v8  ;;  %447 = vmatpush.msra.mxu2 %v245_v11  ;;  %v237_v27 = vld [vmem:[#allocation2 + $0x18] sm:$0xff]  ;;  %v236_v29 = vld [vmem:[#allocation2 + $0x10] sm:$0xff]  ;;  %v235_v31 = vld [vmem:[#allocation2 + $0x8] sm:$0xff]  ;;  %p579_p0 = scmp.ne.s32.totalorder %s577_s30, %s578_s4  ;;  %p583_p3 = scmp.lt.s32.totalorder %s577_s30, %s764_s3 }
  0x20   : > { %463 = vmatpush.msra.mxu3 %v261_v12  ;;  %294 = vmatpush.msra.mxu1 %v262_v9  ;;  %v253_v28 = vld [vmem:[#allocation2 + $0x98] sm:$0xff]  ;;  %v252_v30 = vld [vmem:[#allocation2 + $0x90] sm:$0xff]  ;;  %v251_v32 = vld [vmem:[#allocation2 + $0x88] sm:$0xff]  ;;  %p584_p4 = scmp.lt.s32.totalorder %s582_s7, %s578_s4 }
  0x21   : > { %448 = vmatpush.msra.mxu2 %v244_v13  ;;  %272 = vmatpush.msra.mxu0 %v245_v11  ;;  %v234_v33 = vld [vmem:[#allocation2] sm:$0xff]  ;;  %v267_v41 = vld [vmem:[%s208_s17 + $0x8] sm:$0xff]  ;;  %p580_p1 = pnand %p579_p0, %p695_p5 }
  0x22   : > { %464 = vmatpush.msra.mxu3 %v260_v14  ;;  %295 = vmatpush.msra.mxu1 %v261_v12  ;;  %v250_v34 = vld [vmem:[#allocation2 + $0x80] sm:$0xff]  ;;  %p585_p7 = por %p584_p4, %p583_p3 }
  0x23   : > { %449 = vmatpush.msra.mxu2 %v243_v15  ;;  %273 = vmatpush.msra.mxu0 %v244_v13  ;;  %v266_v43 = vld [vmem:[%s208_s17] sm:$0xff]  ;;  %p581_p2 = pneg %p580_p1 }
  0x24   : > { %465 = vmatpush.msra.mxu3 %v259_v16  ;;  %296 = vmatpush.msra.mxu1 %v260_v14 }
  0x25   : > { %217 = vperm.xlu0 %531, %v211_v10   ;;  %450 = vmatpush.msra.mxu2 %v242_v17  ;;  %p586_p8 = pnand %p585_p7, %p581_p2 }
  0x26   : > { %274 = vmatpush.msra.mxu0 %v243_v15  ;;  %466 = vmatpush.msra.mxu3 %v258_v18 }
  0x27   : > { %297 = vmatpush.msra.mxu1 %v259_v16  ;;  %451 = vmatpush.msra.mxu2 %v241_v19 }
  0x28   : > { %275 = vmatpush.msra.mxu0 %v242_v17  ;;  %467 = vmatpush.msra.mxu3 %v257_v20 }
  0x29   : > { %298 = vmatpush.msra.mxu1 %v258_v18  ;;  %452 = vmatpush.msra.mxu2 %v240_v21 }
  0x2a   : > { %276 = vmatpush.msra.mxu0 %v241_v19  ;;  %468 = vmatpush.msra.mxu3 %v256_v22 }
  0x2b   : > { %299 = vmatpush.msra.mxu1 %v257_v20  ;;  %453 = vmatpush.msra.mxu2 %v239_v23 }
  0x2c   : > { %277 = vmatpush.msra.mxu0 %v240_v21  ;;  %469 = vmatpush.msra.mxu3 %v255_v24 }
  0x2d   : > { %300 = vmatpush.msra.mxu1 %v256_v22  ;;  %454 = vmatpush.msra.mxu2 %v238_v25 }
  0x2e   : > { %278 = vmatpush.msra.mxu0 %v239_v23  ;;  %470 = vmatpush.msra.mxu3 %v254_v26 }
  0x2f   : > { %301 = vmatpush.msra.mxu1 %v255_v24  ;;  %455 = vmatpush.msra.mxu2 %v237_v27 }
  0x30   : > { %279 = vmatpush.msra.mxu0 %v238_v25  ;;  %471 = vmatpush.msra.mxu3 %v253_v28 }
  0x31   : > { %302 = vmatpush.msra.mxu1 %v254_v26  ;;  %456 = vmatpush.msra.mxu2 %v236_v29 }
  0x32   : > { %280 = vmatpush.msra.mxu0 %v237_v27  ;;  %472 = vmatpush.msra.mxu3 %v252_v30 }
  0x33   : > { %303 = vmatpush.msra.mxu1 %v253_v28  ;;  %457 = vmatpush.msra.mxu2 %v235_v31 }
  0x34   : > { %281 = vmatpush.msra.mxu0 %v236_v29  ;;  %473 = vmatpush.msra.mxu3 %v251_v32 }
  0x35   : > { %304 = vmatpush.msra.mxu1 %v252_v30  ;;  %458 = vmatpush.msra.mxu2 %v234_v33 }
  0x36   : > { %282 = vmatpush.msra.mxu0 %v235_v31  ;;  %474 = vmatpush.msra.mxu3 %v250_v34 }
  0x37   : > { %305 = vmatpush.msra.mxu1 %v251_v32 }
  0x38   : > { %283 = vmatpush.msra.mxu0 %v234_v33 }
  0x39   : > { %306 = vmatpush.msra.mxu1 %v250_v34 }
  0x8f   : > { %v221_v38 = vpop.permute.xlu0 %220 }
  0x90   : > { %vm224_vm0 = vcmp.eq.s32.totalorder %v221_v38, %v214_v36  ;;  %vm225_vm1 = vcmp.eq.s32.totalorder %v221_v38, %v215_v37 }
  0x91   : > { %434 = vmatmul.msk.f32.vlgmr.msra.gmra.mxu2 %vm224_vm0, %v634_v39  ;;  %436 = vmatmul.msk.f32.vlgmr.msra.gmra.mxu3 %vm225_vm1, %v634_v39 }
  0x97   : > { %v218_v40 = vpop.permute.xlu0 %217 }
  0x98   : > { %vm222_vm2 = vcmp.eq.s32.totalorder %v218_v40, %v214_v36  ;;  %vm223_vm3 = vcmp.eq.s32.totalorder %v218_v40, %v215_v37 }
  0x99   : > { %433 = vmatmul.msk.f32.vlgmr.msra.gmra.mxu0 %vm222_vm2, %v634_v39  ;;  %435 = vmatmul.msk.f32.vlgmr.msra.gmra.mxu1 %vm223_vm3, %v634_v39 }
 0x114   : > { %v288_v42 = vpop.f32.mrf.mxu2  ;;  %v311_v45 = vpop.f32.mrf.mxu3 }
 0x115   : > { %v289_v44 = vadd.f32 %v288_v42, %v267_v41 }
 0x116   : > { %v285_v46 = vpop.f32.mrf.mxu0  ;;  %v308_v49 = vpop.f32.mrf.mxu1 }
 0x117   : > { %v312_v47 = vadd.f32 %v311_v45, %v289_v44  ;;  %v286_v48 = vadd.f32 %v285_v46, %v266_v43 }
 0x119   : > { %315 = vst [vmem:[%s197_s27 + $0x8] sm:$0xff] %v312_v47  ;;  %v309_v50 = vadd.f32 %v308_v49, %v286_v48 }
 0x11b   : > { %314 = vst [vmem:[%s197_s27] sm:$0xff] %v309_v50 }
 0x11c   : > { %589 = shalt.err (!%p586_p8)
}
 0x11d   : > { %s635_s9 = smov 128   ;;  %s636_s11 = smov 8  }
 0x11e   : > { %479 = dma.vmem_to_hbm [thread:$0]  (%p695_p5), %s330_s28, 256, %s332_s29, %s317_s16, %s635_s9, %s635_s9, %s636_s11  }
 0x11f PF: > { %p491_p9 = scmp.ge.s32.totalorder %s628_s15, 2  ;;  %s346_s17 = sand.u32 1, %s616_s12  }
 0x120   : > { %s347_s19 = scalar_lea.sflag [#allocation4], %s346_s17 }
 0x121   : > { %p486_p10 = pnand %p491_p9, %p699_p6 }
 0x123   : > { %p487_p11 = pneg %p486_p10 }
 0x125   : > { %611 = dma.done.wait (%p487_p11), %s347_s19, 256  }
 0x126   : > { %613 = vsyncadd (%p487_p11), %s347_s19, 4294967040  ;;  %p14_p12 = scmp.ge.s32.totalorder %s682_s18, 4   ;;  %s767_s12 = smov %s620_s13 }
 0x127   : > { %s768_s13 = smov %s624_s14  ;;  %s769_s14 = smov %s693_s21 }
 0x128   : > { %s770_s15 = smov %s682_s18  ;;  %16 = sbr.rel (!%p14_p12) target bundleno = 4 (0x4), region = 75 }
 0x12d   :  { %353 = vsyncpa [#allocation3], 1 }
 0x12e   :  { %355 = vsyncpa [#allocation3 + $0x1], 1 }
 0x12f   :  { %356 = vsyncpa [#allocation4], 1 }
 0x130   :  { %358 = vsyncpa [#allocation4 + $0x1], 1 }

</bundles_post_ra>
